<compile_context>
chip_gen: v6e
topology: v6e:2x2x1
jax: 0.10.0
libtpu: 0.0.40
codegen_flags: <defaults>
</compile_context>

<pallas_src>
import functools
import numpy as np
import jax
import jax.numpy as jnp
from jax.experimental import pallas as pl
from jax.experimental.pallas import tpu as pltpu


def _round_up(x, m):
    return (x + m - 1) // m * m


def _softplus(v):
    # log(1 + exp(v)), numerically stable
    return jnp.logaddexp(v, 0.0)


def nlinear_kernel(xt_ref, w0t_ref, b0_ref, w1t_ref, b1_ref, wht_ref, bh_ref,
                   out_ref, *, pred_len):
    P = pred_len
    x = xt_ref[...]                                                     # (L, TB) f32

    # mean_abs_scaling over the sequence (sublane) axis, clamped at 1e-5 -> (1, TB).
    scale = jnp.maximum(jnp.mean(jnp.abs(x), axis=0, keepdims=True), 1e-5)
    inv = pl.reciprocal(scale)          # exact; 1 EUP row instead of L divide rows
    h = x * inv

    # seq_last = x[:, -1:, :]; x = x - seq_last   (trailing unit dim elided)
    seq_last = h[-1:, :]                                                # (1, TB)
    h = h - seq_last

    # MLP over the sequence axis, batch on lanes (weights pre-transposed).
    # Activation after every linear, matching the reference forward.
    h = jnp.tanh(jnp.dot(w0t_ref[...], h, preferred_element_type=jnp.float32)
                 + b0_ref[...])                                         # (N1, TB)
    h = jnp.tanh(jnp.dot(w1t_ref[...], h, preferred_element_type=jnp.float32)
                 + b1_ref[...])                                         # (H*P, TB)
    h = h + seq_last

    # StudentT args_proj as ONE MXU matmul with a block-diagonal (3P, H*P) weight:
    # z rows are ordered [df_0..df_{P-1} | loc_* | scale_*].
    z = jnp.dot(wht_ref[...], h, preferred_element_type=jnp.float32) + bh_ref[...]

    # StudentTOutput.domain_map: df = 2 + softplus(df); loc = loc; scale = softplus(scale)
    df = 2.0 + _softplus(z[0:P, :])
    loc = z[P:2 * P, :]
    sc = _softplus(z[2 * P:3 * P, :])

    # Single lane-dense store: [df | loc | scale | input_scale]  -> (3P+1, TB)
    out_ref[...] = jnp.concatenate([df, loc, sc, scale], axis=0)


def prepare_params(params, pred_len, hidden_state):
    """One-time (jit-compatible) parameter re-layout for the batch-on-lanes kernel.

    - Transposes both linear weights (kernel computes W.T @ h) and reshapes biases to
      column vectors that broadcast along lanes.
    - Packs the three StudentT Linear(H,1) heads into a dense block-diagonal weight
      W_head of shape (H*P, 3P) with W_head[p*H + h, k*P + p] = w_k[h], plus a (3P,)
      bias, so the whole args_proj is one MXU matmul.
    """
    P, H = pred_len, hidden_state
    w0, b0, w1, b1, w_df, b_df, w_loc, b_loc, w_sc, b_sc = params
    L, N1 = w0.shape
    HP = w1.shape[1]                                            # = P * H

    w0t = w0.T.astype(jnp.float32)                              # (N1, L)
    b0c = b0.reshape(N1, 1).astype(jnp.float32)
    w1t = w1.T.astype(jnp.float32)                              # (HP, N1)
    b1c = b1.reshape(HP, 1).astype(jnp.float32)

    ws = jnp.stack([w_df, w_loc, w_sc]).astype(jnp.float32)     # (3, H)
    eye_p = jnp.eye(P, dtype=jnp.float32)
    # W4[p, h, k, q] = w_k[h] * (p == q); reshape -> [p*H + h, k*P + q]
    w_head = jnp.einsum('kh,pq->phkq', ws, eye_p).reshape(P * H, 3 * P)
    b_head = jnp.concatenate([jnp.full((P,), b_df, jnp.float32),
                              jnp.full((P,), b_loc, jnp.float32),
                              jnp.full((P,), b_sc, jnp.float32)])
    wht = w_head.T                                              # (3P, H*P)
    bhc = b_head.reshape(3 * P, 1)
    return (w0t, b0c, w1t, b1c, wht, bhc)


def nlinear_forward(x, prepared, pred_len, hidden_state):
    """NLinear forward: batch-on-lanes Pallas call; returns ((df, loc, scale), zeros, input_scale)."""
    del hidden_state  # shapes are carried by the prepared weights
    w0t, b0c, w1t, b1c, wht, bhc = prepared
    B, L = x.shape
    P = pred_len
    N1 = w0t.shape[0]
    HP = w1t.shape[0]

    # TILE_B: multiple of 128 (lane width).  Fat tiles amortize the ~0.35us per-grid-step
    # overhead; double-buffered per-step footprint is 2*TILE_B*(L + 3P + 1)*4 bytes plus
    # resident weights, kept under an 8 MiB budget (safe vs v7x's 64 MiB physical /
    # 32 MiB scoped VMEM).  Cap at ceil(B/2) so large batches get >=2 grid steps and the
    # "parallel" batch axis can use both v7x TensorCores.
    row_bytes = 4 * (L + 3 * P + 1)
    vmem_budget = 8 * 1024 * 1024
    tile_cap = max(128, (vmem_budget // (2 * row_bytes)) // 128 * 128)
    TILE_B = min(8192, tile_cap, _round_up((B + 1) // 2, 128))
    B_pad = _round_up(B, TILE_B)

    xt = x.T                                                    # (L, B) batch on lanes
    if B_pad != B:
        xt = jnp.pad(xt, ((0, 0), (0, B_pad - B)))
    grid = (B_pad // TILE_B,)

    kernel = functools.partial(nlinear_kernel, pred_len=P)

    flops = 2 * B_pad * (L * N1 + N1 * HP + HP * 3 * P)
    transcendentals = B_pad * (N1 + HP + 4 * P + 1)             # tanh x2 + softplus + rcp
    bytes_accessed = 4 * (B_pad * (L + 3 * P + 1)
                          + N1 * L + N1 + HP * N1 + HP + 3 * P * HP + 3 * P)

    packed = pl.pallas_call(
        kernel,
        out_shape=jax.ShapeDtypeStruct((3 * P + 1, B_pad), jnp.float32),
        grid=grid,
        in_specs=[
            pl.BlockSpec((L, TILE_B), lambda i: (0, i)),        # x.T: batch-tiled on lanes
            pl.BlockSpec((N1, L), lambda i: (0, 0)),            # W0.T: VMEM-resident
            pl.BlockSpec((N1, 1), lambda i: (0, 0)),            # b0
            pl.BlockSpec((HP, N1), lambda i: (0, 0)),           # W1.T: VMEM-resident
            pl.BlockSpec((HP, 1), lambda i: (0, 0)),            # b1
            pl.BlockSpec((3 * P, HP), lambda i: (0, 0)),        # block-diag head weight.T
            pl.BlockSpec((3 * P, 1), lambda i: (0, 0)),         # head bias
        ],
        out_specs=pl.BlockSpec((3 * P + 1, TILE_B), lambda i: (0, i)),
        compiler_params=pltpu.CompilerParams(
            dimension_semantics=("parallel",)),                 # megacore on v7x
        cost_estimate=pl.CostEstimate(
            flops=flops,
            transcendentals=transcendentals,
            bytes_accessed=bytes_accessed),
    )(xt, w0t, b0c, w1t, b1c, wht, bhc)

    packed = packed[:, :B]                                      # drop padded batch cols
    df = packed[0:P, :].T
    loc = packed[P:2 * P, :].T
    sc = packed[2 * P:3 * P, :].T
    scale = packed[3 * P:3 * P + 1, :].T                        # (B, 1)
    # zeros_like(scale) output carries no compute; emit it in the wrapper.
    return (df, loc, sc), jnp.zeros_like(scale), scale


def nlinear_reference(x, params, pred_len, hidden_state):
    """Pure-JAX reference mirroring the PyTorch forward (original param layout)."""
    P, H = pred_len, hidden_state
    w0, b0, w1, b1, w_df, b_df, w_loc, b_loc, w_sc, b_sc = params
    scale = jnp.maximum(jnp.mean(jnp.abs(x), axis=1, keepdims=True), 1e-5)
    h = x / scale
    seq_last = h[:, -1:]
    h = h - seq_last
    h = jnp.tanh(h @ w0 + b0)
    h = jnp.tanh(h @ w1 + b1)
    h = h + seq_last
    h3 = h.reshape(-1, P, H)
    df = 2.0 + jax.nn.softplus(h3 @ w_df + b_df)
    loc = h3 @ w_loc + b_loc
    sc = jax.nn.softplus(h3 @ w_sc + b_sc)
    return (df, loc, sc), jnp.zeros_like(scale), scale


def init_params(key, nodes, hidden_state):
    """Deterministic nn.Linear-style init: U(-1/sqrt(fan_in), 1/sqrt(fan_in))."""
    ks = jax.random.split(key, 10)

    def lin(kw, kb, fan_in, fan_out):
        bound = 1.0 / np.sqrt(fan_in)
        w = jax.random.uniform(kw, (fan_in, fan_out), jnp.float32, -bound, bound)
        b = jax.random.uniform(kb, (fan_out,), jnp.float32, -bound, bound)
        return w, b

    w0, b0 = lin(ks[0], ks[1], nodes[0], nodes[1])
    w1, b1 = lin(ks[2], ks[3], nodes[1], nodes[2])
    H = hidden_state
    bound = 1.0 / np.sqrt(H)
    w_df = jax.random.uniform(ks[4], (H,), jnp.float32, -bound, bound)
    b_df = jax.random.uniform(ks[5], (), jnp.float32, -bound, bound)
    w_loc = jax.random.uniform(ks[6], (H,), jnp.float32, -bound, bound)
    b_loc = jax.random.uniform(ks[7], (), jnp.float32, -bound, bound)
    w_sc = jax.random.uniform(ks[8], (H,), jnp.float32, -bound, bound)
    b_sc = jax.random.uniform(ks[9], (), jnp.float32, -bound, bound)
    return (w0, b0, w1, b1, w_df, b_df, w_loc, b_loc, w_sc, b_sc)


if __name__ == "__main__":
    # Small shapes: batch=2, context_length=16, hidden=32, prediction_length=4,
    # distribution_hidden_state=8  =>  nodes = [16, 32, 4*8=32]
    B = 2
    context_length = 16
    prediction_length = 4
    distribution_hidden_state = 8
    nodes = [context_length, 32, prediction_length * distribution_hidden_state]

    key = jax.random.PRNGKey(0)
    k_x, k_p = jax.random.split(key)
    x = jax.random.normal(k_x, (B, context_length), jnp.float32)
    params = init_params(k_p, nodes, distribution_hidden_state)

    # One-time parameter re-layout outside the jitted forward.
    prepared = prepare_params(params, prediction_length, distribution_hidden_state)

    fwd = jax.jit(nlinear_forward, static_argnames=("pred_len", "hidden_state"))
    (df, loc, sc), zeros, scale = fwd(x, prepared, pred_len=prediction_length,
                                      hidden_state=distribution_hidden_state)
    jax.block_until_ready((df, loc, sc, zeros, scale))

    (df_r, loc_r, sc_r), zeros_r, scale_r = nlinear_reference(
        x, params, prediction_length, distribution_hidden_state)

    assert np.allclose(np.asarray(df), np.asarray(df_r), atol=1e-5, rtol=1e-5)
    assert np.allclose(np.asarray(loc), np.asarray(loc_r), atol=1e-5, rtol=1e-5)
    assert np.allclose(np.asarray(sc), np.asarray(sc_r), atol=1e-5, rtol=1e-5)
    assert np.allclose(np.asarray(zeros), np.asarray(zeros_r), atol=1e-6)
    assert np.allclose(np.asarray(scale), np.asarray(scale_r), atol=1e-6)

    # TODO(synk): get_predictor / PyTorchPredictor / DistributionForecastGenerator are
    # inference-harness glue (no tensor compute) and are not translated.
    print("KERNEL_OK")
</pallas_src>

<mosaic_0001>
module attributes {stable_mosaic.version = 11 : i64} {
  func.func @nlinear_kernel(%arg0: i32, %arg1: memref<16x128xf32, #tpu.memory_space<vmem>>, %arg2: memref<32x16xf32, #tpu.memory_space<vmem>>, %arg3: memref<32x1xf32, #tpu.memory_space<vmem>>, %arg4: memref<32x32xf32, #tpu.memory_space<vmem>>, %arg5: memref<32x1xf32, #tpu.memory_space<vmem>>, %arg6: memref<12x32xf32, #tpu.memory_space<vmem>>, %arg7: memref<12x1xf32, #tpu.memory_space<vmem>>, %arg8: memref<13x128xf32, #tpu.memory_space<vmem>>) attributes {dimension_semantics = [#tpu.dimension_semantics<parallel>], iteration_bounds = array<i64: 1>, scalar_prefetch = 0 : i64, scratch_operands = 0 : i64, tpu.core_type = #tpu.core_type<tc>, window_params = [{transform_indices = @transform_0, window_bounds = array<i64: 16, 128>}, {pipeline_mode = #tpu.pipeline_mode<synchronous>, transform_indices = @transform_1, window_bounds = array<i64: 32, 16>}, {pipeline_mode = #tpu.pipeline_mode<synchronous>, transform_indices = @transform_2, window_bounds = array<i64: 32, 1>}, {pipeline_mode = #tpu.pipeline_mode<synchronous>, transform_indices = @transform_3, window_bounds = array<i64: 32, 32>}, {pipeline_mode = #tpu.pipeline_mode<synchronous>, transform_indices = @transform_4, window_bounds = array<i64: 32, 1>}, {pipeline_mode = #tpu.pipeline_mode<synchronous>, transform_indices = @transform_5, window_bounds = array<i64: 12, 32>}, {pipeline_mode = #tpu.pipeline_mode<synchronous>, transform_indices = @transform_6, window_bounds = array<i64: 12, 1>}, {transform_indices = @transform_7, window_bounds = array<i64: 13, 128>}]} {
    %c0 = arith.constant 0 : index
    %c0_0 = arith.constant 0 : index
    %0 = vector.load %arg1[%c0, %c0_0] : memref<16x128xf32, #tpu.memory_space<vmem>>, vector<16x128xf32>
    %1 = math.absf %0 : vector<16x128xf32>
    %cst = arith.constant dense<0.000000e+00> : vector<128xf32>
    %2 = vector.multi_reduction <add>, %1, %cst [0] : vector<16x128xf32> to vector<128xf32>
    %3 = vector.shape_cast %2 : vector<128xf32> to vector<1x128xf32>
    %cst_1 = arith.constant 1.600000e+01 : f32
    %4 = vector.broadcast %cst_1 : f32 to vector<1x128xf32>
    %5 = arith.divf %3, %4 : vector<1x128xf32>
    %cst_2 = arith.constant 9.99999974E-6 : f32
    %6 = vector.broadcast %cst_2 : f32 to vector<1x128xf32>
    %7 = arith.maximumf %5, %6 : vector<1x128xf32>
    %8 = tpu.reciprocal %7 : vector<1x128xf32> -> vector<1x128xf32>
    %9 = vector.broadcast %8 : vector<1x128xf32> to vector<16x128xf32>
    %10 = arith.mulf %0, %9 : vector<16x128xf32>
    %11 = vector.extract_strided_slice %10 {offsets = [15, 0], sizes = [1, 128], strides = [1, 1]} : vector<16x128xf32> to vector<1x128xf32>
    %12 = vector.broadcast %11 : vector<1x128xf32> to vector<16x128xf32>
    %13 = arith.subf %10, %12 : vector<16x128xf32>
    %c0_3 = arith.constant 0 : index
    %c0_4 = arith.constant 0 : index
    %14 = vector.load %arg2[%c0_3, %c0_4] : memref<32x16xf32, #tpu.memory_space<vmem>>, vector<32x16xf32>
    %cst_5 = arith.constant dense<0.000000e+00> : vector<32x128xf32>
    %15 = tpu.matmul %14, %13, %cst_5 {dimension_numbers = #tpu.dot_dimension_numbers<[1], [0], [0], [1], [0, 0, 1, 1], [], []>} : vector<32x16xf32>, vector<16x128xf32>, vector<32x128xf32> -> vector<32x128xf32>
    %c0_6 = arith.constant 0 : index
    %c0_7 = arith.constant 0 : index
    %16 = vector.load %arg3[%c0_6, %c0_7] : memref<32x1xf32, #tpu.memory_space<vmem>>, vector<32x1xf32>
    %17 = vector.broadcast %16 : vector<32x1xf32> to vector<32x128xf32>
    %18 = arith.addf %15, %17 : vector<32x128xf32>
    %19 = math.tanh %18 : vector<32x128xf32>
    %c0_8 = arith.constant 0 : index
    %c0_9 = arith.constant 0 : index
    %20 = vector.load %arg4[%c0_8, %c0_9] : memref<32x32xf32, #tpu.memory_space<vmem>>, vector<32x32xf32>
    %cst_10 = arith.constant dense<0.000000e+00> : vector<32x128xf32>
    %21 = tpu.matmul %20, %19, %cst_10 {dimension_numbers = #tpu.dot_dimension_numbers<[1], [0], [0], [1], [0, 0, 1, 1], [], []>} : vector<32x32xf32>, vector<32x128xf32>, vector<32x128xf32> -> vector<32x128xf32>
    %c0_11 = arith.constant 0 : index
    %c0_12 = arith.constant 0 : index
    %22 = vector.load %arg5[%c0_11, %c0_12] : memref<32x1xf32, #tpu.memory_space<vmem>>, vector<32x1xf32>
    %23 = vector.broadcast %22 : vector<32x1xf32> to vector<32x128xf32>
    %24 = arith.addf %21, %23 : vector<32x128xf32>
    %25 = math.tanh %24 : vector<32x128xf32>
    %26 = vector.broadcast %11 : vector<1x128xf32> to vector<32x128xf32>
    %27 = arith.addf %25, %26 : vector<32x128xf32>
    %c0_13 = arith.constant 0 : index
    %c0_14 = arith.constant 0 : index
    %28 = vector.load %arg6[%c0_13, %c0_14] : memref<12x32xf32, #tpu.memory_space<vmem>>, vector<12x32xf32>
    %cst_15 = arith.constant dense<0.000000e+00> : vector<12x128xf32>
    %29 = tpu.matmul %28, %27, %cst_15 {dimension_numbers = #tpu.dot_dimension_numbers<[1], [0], [0], [1], [0, 0, 1, 1], [], []>} : vector<12x32xf32>, vector<32x128xf32>, vector<12x128xf32> -> vector<12x128xf32>
    %c0_16 = arith.constant 0 : index
    %c0_17 = arith.constant 0 : index
    %30 = vector.load %arg7[%c0_16, %c0_17] : memref<12x1xf32, #tpu.memory_space<vmem>>, vector<12x1xf32>
    %31 = vector.broadcast %30 : vector<12x1xf32> to vector<12x128xf32>
    %32 = arith.addf %29, %31 : vector<12x128xf32>
    %33 = vector.extract_strided_slice %32 {offsets = [0, 0], sizes = [4, 128], strides = [1, 1]} : vector<12x128xf32> to vector<4x128xf32>
    %cst_18 = arith.constant 0.000000e+00 : f32
    %34 = vector.broadcast %cst_18 : f32 to vector<4x128xf32>
    %35 = arith.maximumf %33, %34 : vector<4x128xf32>
    %36 = vector.broadcast %cst_18 : f32 to vector<4x128xf32>
    %37 = arith.subf %33, %36 : vector<4x128xf32>
    %38 = arith.cmpf one, %37, %37 : vector<4x128xf32>
    %39 = vector.broadcast %cst_18 : f32 to vector<4x128xf32>
    %40 = arith.addf %33, %39 : vector<4x128xf32>
    %41 = math.absf %37 : vector<4x128xf32>
    %cst_19 = arith.constant 0.000000e+00 : f32
    %42 = vector.broadcast %cst_19 : f32 to vector<4x128xf32>
    %43 = arith.subf %42, %41 : vector<4x128xf32>
    %44 = math.exp %43 : vector<4x128xf32>
    %45 = math.log1p %44 : vector<4x128xf32>
    %46 = arith.addf %35, %45 : vector<4x128xf32>
    %47 = arith.select %38, %40, %46 : vector<4x128xi1>, vector<4x128xf32>
    %cst_20 = arith.constant 2.000000e+00 : f32
    %48 = vector.broadcast %cst_20 : f32 to vector<4x128xf32>
    %49 = arith.addf %48, %47 : vector<4x128xf32>
    %50 = vector.extract_strided_slice %32 {offsets = [4, 0], sizes = [4, 128], strides = [1, 1]} : vector<12x128xf32> to vector<4x128xf32>
    %51 = vector.extract_strided_slice %32 {offsets = [8, 0], sizes = [4, 128], strides = [1, 1]} : vector<12x128xf32> to vector<4x128xf32>
    %cst_21 = arith.constant 0.000000e+00 : f32
    %52 = vector.broadcast %cst_21 : f32 to vector<4x128xf32>
    %53 = arith.maximumf %51, %52 : vector<4x128xf32>
    %54 = vector.broadcast %cst_21 : f32 to vector<4x128xf32>
    %55 = arith.subf %51, %54 : vector<4x128xf32>
    %56 = arith.cmpf one, %55, %55 : vector<4x128xf32>
    %57 = vector.broadcast %cst_21 : f32 to vector<4x128xf32>
    %58 = arith.addf %51, %57 : vector<4x128xf32>
    %59 = math.absf %55 : vector<4x128xf32>
    %cst_22 = arith.constant 0.000000e+00 : f32
    %60 = vector.broadcast %cst_22 : f32 to vector<4x128xf32>
    %61 = arith.subf %60, %59 : vector<4x128xf32>
    %62 = math.exp %61 : vector<4x128xf32>
    %63 = math.log1p %62 : vector<4x128xf32>
    %64 = arith.addf %53, %63 : vector<4x128xf32>
    %65 = arith.select %56, %58, %64 : vector<4x128xi1>, vector<4x128xf32>
    %66 = tpu.concatenate %49, %50, %65, %7 in 0 : vector<4x128xf32>, vector<4x128xf32>, vector<4x128xf32>, vector<1x128xf32> -> vector<13x128xf32>
    %c0_23 = arith.constant 0 : index
    %c0_24 = arith.constant 0 : index
    %67 = vector.load %arg8[%c0_23, %c0_24] : memref<13x128xf32, #tpu.memory_space<vmem>>, vector<13x128xf32>
    tpu.vector_store %arg8[%c0_23, %c0_24], %66 {strides = array<i32>} : memref<13x128xf32, #tpu.memory_space<vmem>>, vector<13x128xf32>,
    return
  }
  func.func @transform_0(%arg0: i32) -> (i32, i32) {
    %c0_i32 = arith.constant 0 : i32
    %c0_i32_0 = arith.constant 0 : i32
    return %c0_i32, %arg0 : i32, i32
  }
  func.func @transform_1(%arg0: i32) -> (i32, i32) {
    %c0_i32 = arith.constant 0 : i32
    %c0_i32_0 = arith.constant 0 : i32
    %c0_i32_1 = arith.constant 0 : i32
    return %c0_i32, %c0_i32_0 : i32, i32
  }
  func.func @transform_2(%arg0: i32) -> (i32, i32) {
    %c0_i32 = arith.constant 0 : i32
    %c0_i32_0 = arith.constant 0 : i32
    %c0_i32_1 = arith.constant 0 : i32
    return %c0_i32, %c0_i32_0 : i32, i32
  }
  func.func @transform_3(%arg0: i32) -> (i32, i32) {
    %c0_i32 = arith.constant 0 : i32
    %c0_i32_0 = arith.constant 0 : i32
    %c0_i32_1 = arith.constant 0 : i32
    return %c0_i32, %c0_i32_0 : i32, i32
  }
  func.func @transform_4(%arg0: i32) -> (i32, i32) {
    %c0_i32 = arith.constant 0 : i32
    %c0_i32_0 = arith.constant 0 : i32
    %c0_i32_1 = arith.constant 0 : i32
    return %c0_i32, %c0_i32_0 : i32, i32
  }
  func.func @transform_5(%arg0: i32) -> (i32, i32) {
    %c0_i32 = arith.constant 0 : i32
    %c0_i32_0 = arith.constant 0 : i32
    %c0_i32_1 = arith.constant 0 : i32
    return %c0_i32, %c0_i32_0 : i32, i32
  }
  func.func @transform_6(%arg0: i32) -> (i32, i32) {
    %c0_i32 = arith.constant 0 : i32
    %c0_i32_0 = arith.constant 0 : i32
    %c0_i32_1 = arith.constant 0 : i32
    return %c0_i32, %c0_i32_0 : i32, i32
  }
  func.func @transform_7(%arg0: i32) -> (i32, i32) {
    %c0_i32 = arith.constant 0 : i32
    %c0_i32_0 = arith.constant 0 : i32
    return %c0_i32, %arg0 : i32, i32
  }
}

</mosaic_0001>

<bundles_post_ra>
// kernel: nlinear_forward.1
= control target key start
LH: loop header
LB: loop body
LE: loop exit
PB: predicated region body
PF: predicated region fallthrough
CT: control target
= control target key end

     0   :  { %vm77_vm0 = vcmask 130048   ;;  %v548_v3 = vmov 0   ;;  %v43_v25 = vlaneseq  ;;  %vm207_vm1 = vcmask 261120   ;;  %s686_s0 = inlined_call_operand.vmem [shape: f32[16,128], index: 0, kind: input, shape index: {}]   ;;  %s687_s1 = inlined_call_operand.vmem [shape: f32[32,16], index: 1, kind: input, shape index: {}]   ;;  %s688_s2 = inlined_call_operand.vmem [shape: f32[32,1], index: 2, kind: input, shape index: {}]   ;;  %s689_s4 = inlined_call_operand.vmem [shape: f32[32,1], index: 4, kind: input, shape index: {}]   ;;  %s690_s6 = inlined_call_operand.vmem [shape: f32[12,1], index: 6, kind: input, shape index: {}]   ;;  %s691_s3 = inlined_call_operand.vmem [shape: f32[32,32], index: 3, kind: input, shape index: {}]   ;;  %s692_s5 = inlined_call_operand.vmem [shape: f32[12,32], index: 5, kind: input, shape index: {}]   ;;  %s693_s7 = inlined_call_operand.vmem [shape: f32[13,128], index: 7, kind: output, shape index: {}]  }
   0x1   :  { %v26_v0 = vld [vmem:[%s686_s0] sm:$0xff]  ;;  %v27_v1 = vld [vmem:[%s686_s0 + $0x8] sm:$0xff]  ;;  %520 = vset.pattern.permute.xlu0 %v548_v3  ;;  %521 = vset.pattern.permute.xlu1 %v548_v3  ;;  %v56_v6 = vld [vmem:[%s688_s2 + $0x18] sm:$0xff]  ;;  %vm445_vm3 = vcmask 1043456  }
   0x2   :  { %v49_v2 = vld [vmem:[%s687_s1] sm:$0xff]  ;;  %v28_v4 = vand.u32 2147483647, %v26_v0  ;;  %v29_v5 = vand.u32 2147483647, %v27_v1  ;;  %74 = vperm.xlu0 %520, %v56_v6   ;;  %v54_v8 = vld [vmem:[%s688_s2 + $0x8] sm:$0xff] }
   0x3   :  { %488 = vmatprep.mubr.msk.f32.mxu0 %vm77_vm0, %v49_v2  ;;  %v55_v9 = vld [vmem:[%s688_s2 + $0x10] sm:$0xff]  ;;  %64 = vperm.xlu1 %521, %v54_v8   ;;  %v53_v11 = vld [vmem:[%s688_s2] sm:$0xff]  ;;  %v186_v13 = vld [vmem:[%s689_s4 + $0x18] sm:$0xff]  ;;  %v44_v26 = vshrl.u32 %v43_v25, 7 }
   0x4   :  { %v30_v7 = vadd.f32 %v29_v5, %v28_v4  ;;  %v185_v15 = vld [vmem:[%s689_s4 + $0x10] sm:$0xff]  ;;  %v184_v17 = vld [vmem:[%s689_s4 + $0x8] sm:$0xff]  ;;  %v183_v19 = vld [vmem:[%s689_s4] sm:$0xff] }
   0x5   :  { %v315_v21 = vld [vmem:[%s690_s6] sm:$0xff]  ;;  %v316_v23 = vld [vmem:[%s690_s6 + $0x8] sm:$0xf]  ;;  %v45_v27 = vsub.s32 7, %v44_v26  ;;  %v51_v35 = vld [vmem:[%s687_s1 + $0x10] sm:$0xff] }
   0x6   :  { %v31_v10 = vrot.slane %v30_v7, 4  ;;  %69 = vperm.xlu0 %520, %v55_v9   ;;  %v50_v34 = vld [vmem:[%s687_s1 + $0x8] sm:$0xff]  ;;  %v52_v36 = vld [vmem:[%s687_s1 + $0x18] sm:$0xff]  ;;  %v179_v37 = vld [vmem:[%s691_s3] sm:$0xff] }
   0x7   :  { %59 = vperm.xlu1 %521, %v53_v11   ;;  %502 = vmatprep.mubr.msk.f32.mxu1 %vm207_vm1, %v179_v37  ;;  %v180_v54 = vld [vmem:[%s691_s3 + $0x8] sm:$0xff]  ;;  %v181_v55 = vld [vmem:[%s691_s3 + $0x10] sm:$0xff]  ;;  %v182_v56 = vld [vmem:[%s691_s3 + $0x18] sm:$0xff] }
   0x8   :  { %v32_v12 = vadd.f32 %v31_v10, %v30_v7  ;;  %v313_v57 = vld [vmem:[%s692_s5] sm:$0xff] }
   0xa   :  { %v33_v14 = vrot.slane %v32_v12, 2  ;;  %204 = vperm.xlu0 %520, %v186_v13  }
   0xb   :  { %199 = vperm.xlu1 %521, %v185_v15  }
   0xc   :  { %v34_v16 = vadd.f32 %v33_v14, %v32_v12  ;;  %v314_v14 = vld [vmem:[%s692_s5 + $0x8] sm:$0xf] }
   0xe   :  { %v35_v18 = vrot.slane %v34_v16, 1  ;;  %194 = vperm.xlu0 %520, %v184_v17  }
   0xf   :  { %189 = vperm.xlu1 %521, %v183_v19  }
  0x10   :  { %v36_v20 = vadd.f32 %v35_v18, %v34_v16 }
  0x12   :  { %v626_v22 = vmul.f32 0.0625, %v36_v20  ;;  %319 = vperm.xlu0 %520, %v315_v21  }
  0x13   :  { %324 = vperm.xlu1 %521, %v316_v23  }
  0x14   :  { %v39_v24 = vmax.f32 %v626_v22, 1e-05 }
  0x16   :  { %522 = vrcp.f32 %v39_v24 }
  0x23   :  { %v523_v28 = vpop.eup %522 }
  0x24   :  { %v42_v29 = vmul.f32 %v523_v28, %v27_v1  ;;  %v41_v30 = vmul.f32 %v523_v28, %v26_v0 }
  0x26   :  { %v634_v31 = vrot.slane %v42_v29, %v45_v27 }
  0x28   :  { %v48_v32 = vsub.f32 %v42_v29, %v634_v31  ;;  %v47_v33 = vsub.f32 %v41_v30, %v634_v31 }
  0x2a   :  { %484 = vmatprep.subr.mxu0 %v48_v32 }
  0x2b   :  { %485 = vmatpush3.msra.mxu0 %v48_v32 }
  0x2c   :  { %486 = vmatprep.subr.mxu0 %v47_v33 }
  0x2d   :  { %487 = vmatpush3.msra.mxu0 %v47_v33 }
  0x2e   :  { %489 = vmatmul.mubr.msk.f32.vlgmr.msra.gmra.mxu0 %vm77_vm0, %v50_v34 }
  0x2f   :  { %491 = vmatprep.mubr.msk.f32.mxu0 %vm77_vm0, %v51_v35 }
  0x32   :  { %492 = vmatmul.mubr.msk.f32.gmra.mxu0 %vm77_vm0, %v52_v36 }
  0x33   :  { %516 = vmatprep.mubr.msk.f32.mxu0 %vm207_vm1, %v313_v57 }
  0x7d   :  { %v75_v38 = vpop.permute.xlu0 %74 }
  0x7e   :  { %v65_v40 = vpop.permute.xlu1 %64 }
  0x81   :  { %v70_v44 = vpop.permute.xlu0 %69 }
  0x82   :  { %v60_v48 = vpop.permute.xlu1 %59 }
  0x85   :  { %v205_v58 = vpop.permute.xlu0 %204 }
  0x86   :  { %v200_v59 = vpop.permute.xlu1 %199 }
  0x89   :  { %v195_v62 = vpop.permute.xlu0 %194 }
  0x8a   :  { %v190_v2 = vpop.permute.xlu1 %189 }
  0x8d   :  { %v320_v18 = vpop.permute.xlu0 %319 }
  0x8e   :  { %v325_v15 = vpop.permute.xlu1 %324 }
  0xee   :  { %v490_v39 = vpop.f32.mrf.mxu0 }
  0xef   :  { %v162_v46 = vadd.f32 %v490_v39, %v65_v40 }
  0xf0   :  { %v156_v41 = vpop.f32.mrf.mxu0 }
  0xf1   :  { %v157_v49 = vadd.f32 %v156_v41, %v60_v48 }
  0xf2   :  { %v493_v42 = vpop.f32.mrf.mxu0 }
  0xf3   :  { %v172_v43 = vadd.f32 %v493_v42, %v75_v38 }
  0xf4   :  { %v166_v45 = vpop.f32.mrf.mxu0 }
  0xf5   :  { %524 = vtanh.f32 %v172_v43  ;;  %v167_v47 = vadd.f32 %v166_v45, %v70_v44 }
  0xf7   :  { %526 = vtanh.f32 %v167_v47 }
  0xf8   :  { %528 = vtanh.f32 %v162_v46 }
  0xf9   :  { %530 = vtanh.f32 %v157_v49 }
 0x102   :  { %v525_v50 = vpop.eup %524 }
 0x103   :  { %494 = vmatprep.subr.mxu1 %v525_v50 }
 0x104   :  { %v527_v51 = vpop.eup %526  ;;  %495 = vmatpush3.msra.mxu1 %v525_v50 }
 0x105   :  { %496 = vmatprep.subr.mxu1 %v527_v51  ;;  %v529_v52 = vpop.eup %528 }
 0x106   :  { %497 = vmatpush3.msra.mxu1 %v527_v51  ;;  %v531_v53 = vpop.eup %530 }
 0x107   :  { %498 = vmatprep.subr.mxu1 %v529_v52 }
 0x108   :  { %499 = vmatpush3.msra.mxu1 %v529_v52 }
 0x109   :  { %500 = vmatprep.subr.mxu1 %v531_v53 }
 0x10a   :  { %501 = vmatpush3.msra.mxu1 %v531_v53 }
 0x10b   :  { %503 = vmatmul.mubr.msk.f32.vlgmr.msra.gmra.mxu1 %vm207_vm1, %v180_v54 }
 0x10c   :  { %505 = vmatprep.mubr.msk.f32.mxu1 %vm207_vm1, %v181_v55 }
 0x10f   :  { %506 = vmatmul.mubr.msk.f32.gmra.mxu1 %vm207_vm1, %v182_v56 }
 0x1cb   :  { %v504_v60 = vpop.f32.mrf.mxu1 }
 0x1cc   :  { %v292_v63 = vadd.f32 %v504_v60, %v195_v62 }
 0x1cd   :  { %v286_v61 = vpop.f32.mrf.mxu1 }
 0x1ce   :  { %v287_v4 = vadd.f32 %v286_v61, %v190_v2 }
 0x1cf   :  { %v507_v0 = vpop.f32.mrf.mxu1 }
 0x1d0   :  { %v302_v1 = vadd.f32 %v507_v0, %v205_v58 }
 0x1d1   :  { %v296_v3 = vpop.f32.mrf.mxu1 }
 0x1d2   :  { %532 = vtanh.f32 %v302_v1  ;;  %v297_v5 = vadd.f32 %v296_v3, %v200_v59 }
 0x1d3   :  { %534 = vtanh.f32 %v292_v63 }
 0x1d4   :  { %536 = vtanh.f32 %v297_v5 }
 0x1d5   :  { %538 = vtanh.f32 %v287_v4 }
 0x1df   :  { %v533_v6 = vpop.eup %532 }
 0x1e0   :  { %v535_v7 = vpop.eup %534  ;;  %v312_v8 = vadd.f32 %v533_v6, %v634_v31 }
 0x1e1   :  { %v537_v9 = vpop.eup %536  ;;  %v310_v12 = vadd.f32 %v535_v7, %v634_v31 }
 0x1e2   :  { %508 = vmatprep.subr.mxu0 %v312_v8  ;;  %v311_v10 = vadd.f32 %v537_v9, %v634_v31  ;;  %v539_v11 = vpop.eup %538 }
 0x1e3   :  { %509 = vmatpush3.msra.mxu0 %v312_v8  ;;  %v309_v13 = vadd.f32 %v539_v11, %v634_v31 }
 0x1e4   :  { %510 = vmatprep.subr.mxu0 %v311_v10 }
 0x1e5   :  { %511 = vmatpush3.msra.mxu0 %v311_v10 }
 0x1e6   :  { %512 = vmatprep.subr.mxu0 %v310_v12 }
 0x1e7   :  { %513 = vmatpush3.msra.mxu0 %v310_v12 }
 0x1e8   :  { %514 = vmatprep.subr.mxu0 %v309_v13 }
 0x1e9   :  { %515 = vmatpush3.msra.mxu0 %v309_v13 }
 0x1ea   :  { %517 = vmatmul.mubr.msk.f32.vlgmr.msra.gmra.mxu0 %vm207_vm1, %v314_v14 }
 0x2aa   :  { %v518_v16 = vpop.f32.mrf.mxu0 }
 0x2ab   :  { %v405_v17 = vadd.f32 %v518_v16, %v325_v15 }
 0x2ac   :  { %v399_v19 = vpop.f32.mrf.mxu0 }
 0x2ad   :  { %v430_v20 = vand.u32 2147483647, %v405_v17  ;;  %v400_v21 = vadd.f32 %v399_v19, %v320_v18  ;;  %v427_v43 = vmax.f32 %v405_v17, 0.0  ;;  %vm428_vm5 = vcmp.ne.f32.partialorder %v405_v17, %v405_v17 }
 0x2af   :  { %v431_v23 = vsub.f32 0.0, %v430_v20  ;;  %v411_v25 = vand.u32 2147483647, %v400_v21  ;;  %v408_v48 = vmax.f32 %v400_v21, 0.0  ;;  %vm409_vm6 = vcmp.ne.f32.partialorder %v400_v21, %v400_v21 }
 0x2b1   :  { %v432_v26 = vmul.f32 1.442695, %v431_v23  ;;  %v412_v27 = vsub.f32 0.0, %v411_v25 }
 0x2b3   :  { %540 = vpow2.f32 %v432_v26  ;;  %v413_v28 = vmul.f32 1.442695, %v412_v27 }
 0x2b5   :  { %542 = vpow2.f32 %v413_v28 }
 0x2c0   :  { %v541_v29 = vpop.eup %540 }
 0x2c1   :  { %v434_v30 = vadd.f32 1.0, %v541_v29  ;;  %v437_v33 = vmul.f32 -0.5, %v541_v29  ;;  %v440_v36 = vand.u32 2147483647, %v541_v29 }
 0x2c2   :  { %v543_v31 = vpop.eup %542 }
 0x2c3   :  { %544 = vlog2.f32 %v434_v30  ;;  %v415_v32 = vadd.f32 1.0, %v543_v31  ;;  %v418_v34 = vmul.f32 -0.5, %v543_v31  ;;  %v438_v35 = vadd.f32 1.0, %v437_v33 }
 0x2c4   :  { %v421_v39 = vand.u32 2147483647, %v543_v31  ;;  %vm441_vm2 = vcmp.lt.f32.partialorder %v440_v36, 0.0004427343 }
 0x2c5   :  { %546 = vlog2.f32 %v415_v32  ;;  %v419_v37 = vadd.f32 1.0, %v418_v34  ;;  %v439_v41 = vmul.f32 %v541_v29, %v438_v35 }
 0x2c6   :  { %vm422_vm4 = vcmp.lt.f32.partialorder %v421_v39, 0.0004427343 }
 0x2c7   :  { %v420_v46 = vmul.f32 %v543_v31, %v419_v37 }
 0x2d0   :  { %v545_v38 = vpop.eup %544 }
 0x2d1   :  { %v436_v40 = vmul.f32 0.6931472, %v545_v38 }
 0x2d2   :  { %v547_v42 = vpop.eup %546 }
 0x2d3   :  { %v442_v44 = vsel %vm441_vm2, %v439_v41, %v436_v40  ;;  %v417_v45 = vmul.f32 0.6931472, %v547_v42 }
 0x2d4   :  { %v443_v47 = vadd.f32 %v442_v44, %v427_v43 }
 0x2d5   :  { %v423_v49 = vsel %vm422_vm4, %v420_v46, %v417_v45 }
 0x2d6   :  { %v444_v50 = vsel %vm428_vm5, %v405_v17, %v443_v47  ;;  %v424_v51 = vadd.f32 %v423_v49, %v408_v48 }
 0x2d7   :  { %v447_v52 = vsel %vm445_vm3, %v444_v50, %v39_v24 }
 0x2d8   :  { %449 = vst [vmem:[%s693_s7 + $0x8] sm:$0x1f] %v447_v52  ;;  %v425_v53 = vsel %vm409_vm6, %v400_v21, %v424_v51 }
 0x2d9   :  { %v426_v54 = vadd.f32 2.0, %v425_v53 }
 0x2db   :  { %v446_v55 = vsel %vm445_vm3, %v426_v54, %v400_v21 }
 0x2dc   :  { %448 = vst [vmem:[%s693_s7] sm:$0xff] %v446_v55 }

</bundles_post_ra>
